<compile_context>
chip_gen: v6e
topology: v6e:2x2x1
jax: 0.10.0
libtpu: 0.0.40
codegen_flags: <defaults>
</compile_context>

<pallas_src>
import jax
import jax.numpy as jnp
from jax.experimental import pallas as pl
from jax.experimental.pallas import tpu as pltpu


def _transpose_bcast_kernel(x_ref, o_ref):
    # x_ref: (TP, TH, TW) block of input planes
    # o_ref: (REPS, TP, TW, TH) replicated, transposed output block
    xt = jnp.transpose(x_ref[...], (0, 2, 1))  # one XLU transpose per plane
    for r in range(o_ref.shape[0]):            # REPS is small & static (3)
        o_ref[r] = xt                          # 3 stores from the same vregs


def _pick_tiles(BC, H, W, reps, dtype_bytes, budget_bytes):
    """Pick (tp, th, tw): planes per step and in-plane tile.

    Per-step VMEM footprint (double-buffered input + output blocks plus one
    transposed temporary / internal scratch tile):
        2 * tp*th*tw  +  2 * reps*tp*tw*th  +  1 * tp*tw*th   elements
      = (2*(1+reps) + 1) * tp*th*tw                           elements.
    """
    factor = (2 * (1 + reps) + 1) * dtype_bytes
    max_elems = max(1, budget_bytes // factor)

    th, tw = H, W
    # Large planes: shrink H/W tiles to multiples of 128 until they fit.
    # (A multiple of 128 satisfies the (8,128) block constraint on both the
    # input block's (th, tw) and the output block's (tw, th).)
    while th * tw > max_elems and (th > 128 or tw > 128):
        if th >= tw and th > 128:
            th = max(128, ((th // 2) // 128) * 128)
        elif tw > 128:
            tw = max(128, ((tw // 2) // 128) * 128)
        else:
            break

    if th == H and tw == W:
        # Full planes fit: process as many planes per step as the budget allows.
        tp = max(1, max_elems // (th * tw))
    else:
        tp = 1
    tp = min(tp, BC)

    # Guarantee >= min(BC, 4) grid steps along the plane axis so the
    # "parallel" axis can shard across v7x's 2 TensorCores and the pipeline
    # has something to overlap (costs ~0% BW, removes the grid=(1,) collapse).
    desired_steps = min(BC, 4)
    tp = min(tp, max(1, BC // desired_steps))
    return tp, th, tw


def transpose_view_concat(x, *, reps=3, vmem_tile_budget_bytes=8 * 1024 * 1024):
    """x: (B, C, H, W) -> (reps*B, C, W, H), equivalent to
    torch.cat([x.transpose(2, 3)] * reps, dim=0)."""
    B, C, H, W = x.shape
    BC = B * C
    dtype_bytes = jnp.dtype(x.dtype).itemsize

    # Fuse (B, C) -> BC so many planes can be handled per grid step.
    x2 = x.reshape(BC, H, W)

    tp, th, tw = _pick_tiles(BC, H, W, reps, dtype_bytes, vmem_tile_budget_bytes)
    grid = (pl.cdiv(BC, tp), pl.cdiv(H, th), pl.cdiv(W, tw))

    out_shape = jax.ShapeDtypeStruct((reps, BC, W, H), x.dtype)

    in_spec = pl.BlockSpec(
        (tp, th, tw),
        lambda i, j, k: (i, j, k),           # each input element read once
    )
    out_spec = pl.BlockSpec(
        (reps, tp, tw, th),
        lambda i, j, k: (0, i, k, j),        # all replicas written in one step
    )

    # Explicit scoped-VMEM limit: actual footprint (incl. transpose temp) with
    # 2x headroom for compiler scratch; safe on v5e/v6e/v7x.
    footprint = (2 * (1 + reps) + 1) * tp * th * tw * dtype_bytes
    vmem_limit = int(min(40 * 1024 * 1024, max(16 * 1024 * 1024, 2 * footprint)))

    total_bytes = (1 + reps) * BC * H * W * dtype_bytes  # 1 read + reps writes
    cost = pl.CostEstimate(flops=0, transcendentals=0, bytes_accessed=total_bytes)

    out = pl.pallas_call(
        _transpose_bcast_kernel,
        out_shape=out_shape,
        grid_spec=pltpu.PrefetchScalarGridSpec(
            num_scalar_prefetch=0,
            grid=grid,
            in_specs=[in_spec],
            out_specs=out_spec,
        ),
        compiler_params=pltpu.CompilerParams(
            # All grid axes are independent (no accumulation) -> fully parallel.
            dimension_semantics=("parallel", "parallel", "parallel"),
            vmem_limit_bytes=vmem_limit,
        ),
        cost_estimate=cost,
    )(x2)

    # (reps, B*C, W, H) -> (reps*B, C, W, H): free, layout-preserving reshape;
    # row r*B + b of the result is replica r of batch b, matching torch.cat.
    return out.reshape(reps * B, C, W, H)


if __name__ == "__main__":
    key = jax.random.PRNGKey(0)
    x = jax.random.normal(key, (2, 4, 16, 16), dtype=jnp.float32)

    out = transpose_view_concat(x)
    out = jax.block_until_ready(out)

    # Reference check in plain JAX.
    ref = jnp.concatenate([jnp.swapaxes(x, 2, 3)] * 3, axis=0)
    assert out.shape == (6, 4, 16, 16), out.shape
    assert jnp.allclose(out, ref), "mismatch vs reference"

    print("KERNEL_OK")
</pallas_src>

<mosaic_0001>
module attributes {stable_mosaic.version = 11 : i64} {
  func.func @_transpose_bcast_kernel(%arg0: i32, %arg1: i32, %arg2: i32, %arg3: memref<2x16x16xf32, #tpu.memory_space<vmem>>, %arg4: memref<3x2x16x16xf32, #tpu.memory_space<vmem>>) attributes {dimension_semantics = [#tpu.dimension_semantics<parallel>, #tpu.dimension_semantics<parallel>, #tpu.dimension_semantics<parallel>], iteration_bounds = array<i64: 4, 1, 1>, scalar_prefetch = 0 : i64, scratch_operands = 0 : i64, tpu.core_type = #tpu.core_type<tc>, window_params = [{transform_indices = @transform_0, window_bounds = array<i64: 2, 16, 16>}, {transform_indices = @transform_1, window_bounds = array<i64: 3, 2, 16, 16>}]} {
    %c0 = arith.constant 0 : index
    %c0_0 = arith.constant 0 : index
    %c0_1 = arith.constant 0 : index
    %0 = vector.load %arg3[%c0, %c0_0, %c0_1] : memref<2x16x16xf32, #tpu.memory_space<vmem>>, vector<2x16x16xf32>
    %1 = tpu.transpose %0, [0, 2, 1] : vector<2x16x16xf32> -> vector<2x16x16xf32>
    %c0_2 = arith.constant 0 : index
    %c0_3 = arith.constant 0 : index
    %c0_4 = arith.constant 0 : index
    %c0_5 = arith.constant 0 : index
    %2 = vector.load %arg4[%c0_2, %c0_3, %c0_4, %c0_5] : memref<3x2x16x16xf32, #tpu.memory_space<vmem>>, vector<1x2x16x16xf32>
    %3 = vector.shape_cast %2 : vector<1x2x16x16xf32> to vector<2x16x16xf32>
    %4 = vector.shape_cast %1 : vector<2x16x16xf32> to vector<1x2x16x16xf32>
    tpu.vector_store %arg4[%c0_2, %c0_3, %c0_4, %c0_5], %4 {strides = array<i32>} : memref<3x2x16x16xf32, #tpu.memory_space<vmem>>, vector<1x2x16x16xf32>,
    %c1 = arith.constant 1 : index
    %c0_6 = arith.constant 0 : index
    %c0_7 = arith.constant 0 : index
    %c0_8 = arith.constant 0 : index
    %5 = vector.load %arg4[%c1, %c0_6, %c0_7, %c0_8] : memref<3x2x16x16xf32, #tpu.memory_space<vmem>>, vector<1x2x16x16xf32>
    %6 = vector.shape_cast %5 : vector<1x2x16x16xf32> to vector<2x16x16xf32>
    %7 = vector.shape_cast %1 : vector<2x16x16xf32> to vector<1x2x16x16xf32>
    tpu.vector_store %arg4[%c1, %c0_6, %c0_7, %c0_8], %7 {strides = array<i32>} : memref<3x2x16x16xf32, #tpu.memory_space<vmem>>, vector<1x2x16x16xf32>,
    %c2 = arith.constant 2 : index
    %c0_9 = arith.constant 0 : index
    %c0_10 = arith.constant 0 : index
    %c0_11 = arith.constant 0 : index
    %8 = vector.load %arg4[%c2, %c0_9, %c0_10, %c0_11] : memref<3x2x16x16xf32, #tpu.memory_space<vmem>>, vector<1x2x16x16xf32>
    %9 = vector.shape_cast %8 : vector<1x2x16x16xf32> to vector<2x16x16xf32>
    %10 = vector.shape_cast %1 : vector<2x16x16xf32> to vector<1x2x16x16xf32>
    tpu.vector_store %arg4[%c2, %c0_9, %c0_10, %c0_11], %10 {strides = array<i32>} : memref<3x2x16x16xf32, #tpu.memory_space<vmem>>, vector<1x2x16x16xf32>,
    return
  }
  func.func @transform_0(%arg0: i32, %arg1: i32, %arg2: i32) -> (i32, i32, i32) {
    %c0_i32 = arith.constant 0 : i32
    return %arg0, %arg1, %arg2 : i32, i32, i32
  }
  func.func @transform_1(%arg0: i32, %arg1: i32, %arg2: i32) -> (i32, i32, i32, i32) {
    %c0_i32 = arith.constant 0 : i32
    %c0_i32_0 = arith.constant 0 : i32
    return %c0_i32, %arg0, %arg2, %arg1 : i32, i32, i32, i32
  }
}

</mosaic_0001>

<bundles_post_ra>
// kernel: tpu_custom_call.1
= control target key start
LH: loop header
LB: loop body
LE: loop exit
PB: predicated region body
PF: predicated region fallthrough
CT: control target
= control target key end

     0   :  { %6 = vsyncpa [#allocation3], 0  ;;  %s741_s0 = inlined_call_operand.hbm [shape: f32[8,16,16], index: 0, kind: input, shape index: {}]   ;;  %s742_s1 = inlined_call_operand.hbm [shape: f32[3,8,16,16], index: 1, kind: output, shape index: {}]  }
   0x1   :  { %8 = vsyncpa [#allocation3 + $0x1], 0 }
   0x2   :  { %9 = vsyncpa [#allocation4], 0 }
   0x3   :  { %11 = vsyncpa [#allocation4 + $0x1], 0  ;;  %s596_s6 = smov 0   ;;  %s598_s7 = smov 0  }
   0x4   :  { %s600_s8 = smov 0   ;;  %s602_s9 = smov 0  }
   0x5   :  { %s604_s10 = smov 0   ;;  %s606_s11 = smov 0  }
   0x6 LB: > { %s386_s12 = sadd.s32 4294967295, %s574_s11   ;;  %s387_s13 = sadd.s32 4294967294, %s574_s11   ;;  %s574_s11 = sphi %s606_s11, %s17_s11   ;;  %s570_s10 = sphi %s604_s10, %s752_s10   ;;  %s566_s9 = sphi %s602_s9, %s751_s9   ;;  %s562_s8 = sphi %s600_s8, %s750_s8   ;;  %s558_s7 = sphi %s598_s7, %s749_s7   ;;  %s554_s6 = sphi %s596_s6, %s748_s6  }
   0x7   : > { %s36_s14 = sadd.s32 1, %s570_s10  ;;  %s47_s15 = sadd.s32 1, %s562_s8 }
   0x8   : > { %p38_p0 = scmp.ge.s32.totalorder %s36_s14, 4  ;;  %p54_p1 = scmp.ne.s32.totalorder %s562_s8, %s558_s7 }
   0x9   : > { %p55_p2 = scmp.eq.s32.totalorder %s574_s11, 0  ;;  %p60_p3 = scmp.ne.s32.totalorder %s558_s7, %s554_s6 }
   0xa   : > { %s754_s14 = smov (%p38_p0, %s36_s14), 0  ;;  %p61_p5 = scmp.eq.s32.totalorder %s386_s12, 0 }
   0xb   : > { %p637_p4 = por %p55_p2, %p54_p1  ;;  %s40_s17 = ssub.s32 %s570_s10, %s754_s14 }
   0xc   : > { %p88_p6 = scmp.eq.s32.totalorder %s386_s12, 3  ;;  %p45_p7 = scmp.eq.s32.totalorder %s40_s17, 0 }
   0xd   : > { %p643_p8 = por %p61_p5, %p60_p3  ;;  %p94_p10 = scmp.eq.s32.totalorder %s387_s13, 3 }
   0xe   : > { %p647_p9 = por %p88_p6, %p54_p1  ;;  %p432_p12 = scmp.lt.s32.totalorder %s574_s11, 4 }
   0xf   : > { %s652_s20 = scalar_select %p45_p7, %s562_s8, %s47_s15  }
  0x10   : > { %p654_p11 = por %p94_p10, %p60_p3  ;;  %s114_s22 = sand.u32 1, %s562_s8  }
  0x11   : > { %s390_s23 = sshll.u32 %s114_s22, 5  ;;  %s410_s24 = sshll.u32 %s570_s10, 9 }
  0x12   : > { %s128_s27 = scalar_lea.hbm %s741_s0, %s410_s24  ;;  %s118_s28 = scalar_lea.vmem [#allocation2], %s390_s23 }
  0x13   : > { %s129_s29 = sshll.u32 %s118_s28, 4  ;;  %p666_p13 = pnand %p432_p12, %p637_p4  ;;  %s130_s29 = int_to_ptr.vmem [resolvable:$true] %s129_s29 }
  0x14   : > { %p394_p0 = scmp.ge.s32.totalorder %s574_s11, 1  ;;  %s115_s2 = scalar_lea.sflag [#allocation3], %s114_s22 }
  0x15   : > { %p494_p1 = pneg %p666_p13  ;;  %s505_s3 = scalar_lea.vmem %s130_s29, 512 }
  0x16   : > { %p506_p2 = scmp.ne.s32.totalorder %s130_s29, %s505_s3  ;;  %s576_s4 = smov [#allocation2]  }
  0x17   : > { %s510_s5 = sshll.u32 %s576_s4, 4  ;;  %s511_s5 = int_to_ptr.vmem [resolvable:$false] %s510_s5 }
  0x18   : > { %p508_p3 = pnand %p506_p2, %p494_p1  ;;  %s512_s12 = scalar_lea.vmem %s511_s5, 1024 }
  0x19   : > { %p513_p6 = scmp.lt.s32.totalorder %s130_s29, %s511_s5  ;;  %p514_p7 = scmp.lt.s32.totalorder %s512_s12, %s505_s3 }
  0x1a   : > { %p509_p5 = pneg %p508_p3 }
  0x1b   : > { %p515_p10 = por %p514_p7, %p513_p6 }
  0x1d   : > { %p516_p4 = pnand %p515_p10, %p509_p5 }
  0x1f   : > { %519 = shalt.err (!%p516_p4)
}
  0x20   : > { %s577_s13 = smov 128   ;;  %s578_s15 = smov 8  }
  0x21   : > { %427 = dma.hbm_to_vmem [thread:$0]  (!%p666_p13), %s128_s27, 512, %s130_s29, %s115_s2, %s577_s13, %s577_s13, %s578_s15  }
  0x22   : > { %p137_p12 = scmp.lt.s32.totalorder %s574_s11, 5 }
  0x24   : > { %p138_p1 = pnand %p394_p0, %p137_p12 }
  0x25   : > { %s679_s16 = sand.u32 (!%p138_p1), 1, %s558_s7  }
  0x26   : > { %141 = sbr.rel (%p138_p1) target bundleno = 186 (0xba), region = 24  ;;  %s395_s17 = sshll.u32 (!%p138_p1), %s679_s16, 5 }
  0x27   : > { %s144_s22 = scalar_lea.sflag (!%p138_p1), [#allocation3], %s679_s16  ;;  %s147_s23 = scalar_lea.vmem (!%p138_p1), [#allocation2], %s395_s17 }
  0x2b   : > { %545 = dma.done.wait (%p643_p8), %s144_s22, 512  }
  0x2c   : > { %547 = vsyncadd (%p643_p8), %s144_s22, 4294966784  ;;  %v172_v0 = vld [vmem:[%s147_s23 + $0x10] sm:$0xff]  ;;  %v170_v1 = vld [vmem:[%s147_s23] sm:$0xff]  ;;  %s413_s24 = smul.u32 96, %s679_s16  ;;  %vm238_vm0 = vcmask 130048   ;;  %s254_s18 = scalar_lea.sflag [#allocation4], %s679_s16 }
  0x2d   : > { %206 = vxpose.xlu1.b32.start [1/2] (short) (narrow) %v172_v0, 16  ;;  %174 = vxpose.xlu0.b32.start [1/2] (short) (narrow) %v170_v1, 16  ;;  %v173_v2 = vld [vmem:[%s147_s23 + $0x18] sm:$0xff]  ;;  %v171_v3 = vld [vmem:[%s147_s23 + $0x8] sm:$0xff] }
  0x2e   : > { %s165_s25 = scalar_lea.vmem [#allocation5], %s413_s24 }
  0x31   : > { %207 = vxpose.xlu1.b32.end [2/2] (short) (narrow) %v173_v2, 16  ;;  %175 = vxpose.xlu0.b32.end [2/2] (short) (narrow) %v171_v3, 16 }
  0xa9   : > { %v222_v4 = vpop.trf.xlu1  ;;  %v190_v5 = vpop.trf.xlu0 }
  0xaa   : > { %241 = vst.msk [vmem:[%s165_s25 + $0x10] sm:$0xff] %vm238_vm0, %v222_v4  ;;  %398 = vst.msk [vmem:[%s165_s25 + $0x30] sm:$0xff] %vm238_vm0, %v222_v4 }
  0xab   : > { %402 = vst.msk [vmem:[%s165_s25 + $0x50] sm:$0xff] %vm238_vm0, %v222_v4  ;;  %239 = vst.msk [vmem:[%s165_s25] sm:$0xff] %vm238_vm0, %v190_v5 }
  0xac   : > { %396 = vst.msk [vmem:[%s165_s25 + $0x20] sm:$0xff] %vm238_vm0, %v190_v5  ;;  %400 = vst.msk [vmem:[%s165_s25 + $0x40] sm:$0xff] %vm238_vm0, %v190_v5 }
  0xad   : > { %v223_v6 = vpop.trf.xlu1  ;;  %v191_v7 = vpop.trf.xlu0 }
  0xae   : > { %242 = vst.msk [vmem:[%s165_s25 + $0x18] sm:$0xff] %vm238_vm0, %v223_v6  ;;  %399 = vst.msk [vmem:[%s165_s25 + $0x38] sm:$0xff] %vm238_vm0, %v223_v6 }
  0xaf   : > { %403 = vst.msk [vmem:[%s165_s25 + $0x58] sm:$0xff] %vm238_vm0, %v223_v6  ;;  %240 = vst.msk [vmem:[%s165_s25 + $0x8] sm:$0xff] %vm238_vm0, %v191_v7 }
  0xb0   : > { %397 = vst.msk [vmem:[%s165_s25 + $0x28] sm:$0xff] %vm238_vm0, %v191_v7  ;;  %401 = vst.msk [vmem:[%s165_s25 + $0x48] sm:$0xff] %vm238_vm0, %v191_v7 }
  0xb1   : > { %s412_s26 = sshll.u32 %s566_s9, 9  ;;  %s281_s27 = sshll.u32 %s165_s25, 4  ;;  %s282_s27 = int_to_ptr.vmem [resolvable:$true] %s281_s27 }
  0xb2   : > { %s270_s30 = scalar_lea.hbm %s742_s1, %s412_s26  ;;  %s579_s2 = smov 512  }
  0xb3   : > { %416 = sst [smem:[#allocation7]] (%p647_p9), %s579_s2  ;;  %s580_s3 = smov 2048  }
  0xb4   : > { %417 = sst [smem:[#allocation7 + $0x1]] (%p647_p9), %s580_s3  ;;  %s581_s4 = smov 4  }
  0xb5   : > { %418 = sst [smem:[#allocation7 + $0x2]] (%p647_p9), %s581_s4  ;;  %s582_s5 = smov 128  }
  0xb6   : > { %419 = sst [smem:[#allocation7 + $0x3]] (%p647_p9), %s582_s5  ;;  %s583_s9 = smov 8  }
  0xb7   : > { %420 = sst [smem:[#allocation7 + $0x4]] (%p647_p9), %s582_s5  ;;  %s584_s12 = smov 131072  }
  0xb8   : > { %421 = sst [smem:[#allocation7 + $0x5]] (%p647_p9), %s583_s9  ;;  %s585_s13 = smov 0  }
  0xb9   : > { %422 = dma.general (%p647_p9), %s282_s27, 1536, %s270_s30, %s254_s18, %s584_s12, [#allocation7], %s585_s13, 0  }
  0xba PF: > { %p433_p8 = scmp.ge.s32.totalorder %s574_s11, 2  ;;  %s309_s15 = sand.u32 1, %s554_s6  }
  0xbb   : > { %s310_s16 = scalar_lea.sflag [#allocation4], %s309_s15 }
  0xbc   : > { %p429_p13 = pnand %p433_p8, %p654_p11 }
  0xbe   : > { %p430_p0 = pneg %p429_p13 }
  0xc0   : > { %549 = dma.done.wait (%p430_p0), %s310_s16, 1536  }
  0xc1   : > { %551 = vsyncadd (%p430_p0), %s310_s16, 4294965760  ;;  %s17_s11 = sadd.s32 1, %s574_s11   ;;  %s748_s6 = smov %s558_s7 }
  0xc2   : > { %p14_p2 = scmp.ge.s32.totalorder %s17_s11, 6   ;;  %s749_s7 = smov %s562_s8 }
  0xc3   : > { %s750_s8 = smov %s652_s20  ;;  %s751_s9 = smov %s570_s10 }
  0xc4   : > { %s752_s10 = smov %s754_s14  ;;  %16 = sbr.rel (!%p14_p2) target bundleno = 6 (0x6), region = 76 }
  0xc9   :  { %315 = vsyncpa [#allocation3], 1 }
  0xca   :  { %317 = vsyncpa [#allocation3 + $0x1], 1 }
  0xcb   :  { %318 = vsyncpa [#allocation4], 1 }
  0xcc   :  { %320 = vsyncpa [#allocation4 + $0x1], 1 }

</bundles_post_ra>
